<compile_context>
chip_gen: v5e
topology: v5e:2x2
jax: 0.10.0
libtpu: 0.0.40
codegen_flags: <defaults>
</compile_context>

<pallas_src>
import jax
import jax.numpy as jnp
from jax.experimental import pallas as pl
from jax.experimental.pallas import tpu as pltpu

_EPS = 1e-6                  # kornia branch threshold on theta^2 / axis guard
_LANE = 128
_DEFAULT_BLOCK_ROWS = 1024   # sublane rows per grid step (v6e sweet spot; pass 2048 on v7x)
_MIN_ROWS_FOR_SPLIT = 16     # ensure >= 2 grid steps whenever r >= 16 (v7x megacore)
_VMEM_LIMIT = 32 * 1024 * 1024


def _round_up(x: int, m: int) -> int:
    return ((x + m - 1) // m) * m


def _angle_axis_kernel(aa_ref, out_ref):
    # aa_ref: (3, S, 128) ; out_ref: (9, S, 128)
    f32 = jnp.float32
    rx = aa_ref[0].astype(f32)          # (S, 128)
    ry = aa_ref[1].astype(f32)
    rz = aa_ref[2].astype(f32)

    theta2 = rx * rx + ry * ry + rz * rz
    theta = jnp.sqrt(theta2)            # EUP
    inv = 1.0 / (theta + _EPS)          # EUP; kornia's 1/(theta+eps), finite for padded zeros
    c = jnp.cos(theta)
    s = jnp.sin(theta)
    k = 1.0 - c

    m = theta2 > _EPS
    one = jnp.ones_like(rx)
    zero = jnp.zeros_like(rx)

    # Blended coefficients: every matrix entry is D + C*ri*rj or C*ri*rj +/- A*rk.
    # Normal branch: A = sin(t)/t, C = (1-cos t)/t^2, D = cos t.
    # Taylor branch: A = 1, C = 0, D = 1  -> exactly I + skew(r).
    a_c = jnp.where(m, s * inv, one)
    c_c = jnp.where(m, k * inv * inv, zero)
    d_c = jnp.where(m, c, one)

    xy = c_c * rx * ry
    xz = c_c * rx * rz
    yz = c_c * ry * rz
    ax = a_c * rx
    ay = a_c * ry
    az = a_c * rz

    odt = out_ref.dtype
    # Per-plane full-slab, lane-dense stores (no concatenates, no masked vst).
    out_ref[0] = (d_c + c_c * rx * rx).astype(odt)
    out_ref[1] = (xy - az).astype(odt)
    out_ref[2] = (xz + ay).astype(odt)
    out_ref[3] = (xy + az).astype(odt)
    out_ref[4] = (d_c + c_c * ry * ry).astype(odt)
    out_ref[5] = (yz - ax).astype(odt)
    out_ref[6] = (xz - ay).astype(odt)
    out_ref[7] = (yz + ax).astype(odt)
    out_ref[8] = (d_c + c_c * rz * rz).astype(odt)


def angle_axis_to_rotation_matrix(angle_axis: jax.Array,
                                  *,
                                  block_rows: int = _DEFAULT_BLOCK_ROWS,
                                  out_dtype=None,
                                  packed_output: bool = False) -> jax.Array:
    """angle_axis: (N, 3) -> (N, 3, 3) (kornia semantics).

    packed_output=True returns the kernel-native (9, R, 128) plane slab
    (row-major matrix entries, batch folded onto (sublane, lane)) with no
    post-processing copy; the caller is responsible for the layout.
    """
    assert angle_axis.ndim == 2 and angle_axis.shape[1] == 3
    n = angle_axis.shape[0]
    in_dtype = angle_axis.dtype
    odt = jnp.dtype(out_dtype) if out_dtype is not None else in_dtype

    # ---- tile selection -----------------------------------------------------
    r = pl.cdiv(max(n, 1), _LANE)                 # number of 128-wide lane rows
    if r >= _MIN_ROWS_FOR_SPLIT:
        steps = max(pl.cdiv(r, block_rows), 2)    # >= 2 steps for dual-TC v7x
    else:
        steps = pl.cdiv(r, block_rows)            # == 1 for tiny batches
    s = _round_up(pl.cdiv(r, steps), 8)           # sublane rows per step, tight
    steps = pl.cdiv(r, s)
    r_pad = steps * s
    n_tot = r_pad * _LANE

    # ---- input glue: pad batch, fold onto (component, sublane, lane) --------
    # Padded rows are zeros -> Taylor branch -> identity, sliced away below.
    aa = jnp.pad(angle_axis, ((0, n_tot - n), (0, 0)))        # (n_tot, 3)
    aa = aa.T.reshape(3, r_pad, _LANE)                        # (3, r_pad, 128)

    in_bytes = jnp.dtype(in_dtype).itemsize
    out_bytes = odt.itemsize

    out = pl.pallas_call(
        _angle_axis_kernel,
        out_shape=jax.ShapeDtypeStruct((9, r_pad, _LANE), odt),
        grid=(steps,),
        in_specs=[pl.BlockSpec((3, s, _LANE), lambda i: (0, i, 0))],
        out_specs=pl.BlockSpec((9, s, _LANE), lambda i: (0, i, 0)),
        compiler_params=pltpu.CompilerParams(
            dimension_semantics=("parallel",),
            vmem_limit_bytes=_VMEM_LIMIT),
        cost_estimate=pl.CostEstimate(
            flops=40 * n_tot,
            transcendentals=4 * n_tot,
            bytes_accessed=(3 * in_bytes + 9 * out_bytes) * n_tot),
    )(aa)                                                     # (9, r_pad, 128)

    if packed_output:
        return out

    # Glue back to the PyTorch (N, 3, 3) contract (single transpose copy).
    return jnp.transpose(out, (1, 2, 0)).reshape(n_tot, 9)[:n].reshape(n, 3, 3)


class AngleAxis:
    """Pallas counterpart of moai's AngleAxis module (convert_to='rot_mat')."""

    def __init__(self, convert_to: str = "rot_mat"):
        if convert_to == "rot_mat":
            self.convert_func = angle_axis_to_rotation_matrix
        else:
            # TODO(synk): 'quat' conversion (angle_axis_to_quaternion) not implemented.
            raise NotImplementedError(
                f"rotational conversion {convert_to!r} not supported here")

    def __call__(self, angle_axis: jax.Array) -> jax.Array:
        return self.convert_func(angle_axis)


def _reference(angle_axis: jax.Array) -> jax.Array:
    # Pure-JAX port of kornia.angle_axis_to_rotation_matrix for validation.
    rx, ry, rz = (angle_axis[:, 0:1], angle_axis[:, 1:2], angle_axis[:, 2:3])
    theta2 = rx * rx + ry * ry + rz * rz
    theta = jnp.sqrt(theta2)
    wx, wy, wz = (v / (theta + _EPS) for v in (rx, ry, rz))
    c, s = jnp.cos(theta), jnp.sin(theta)
    k = 1.0 - c
    normal = jnp.concatenate([
        c + wx * wx * k, wx * wy * k - wz * s, wy * s + wx * wz * k,
        wz * s + wx * wy * k, c + wy * wy * k, -wx * s + wy * wz * k,
        -wy * s + wx * wz * k, wx * s + wy * wz * k, c + wz * wz * k,
    ], axis=1).reshape(-1, 3, 3)
    one = jnp.ones_like(rx)
    taylor = jnp.concatenate(
        [one, -rz, ry, rz, one, -rx, -ry, rx, one], axis=1).reshape(-1, 3, 3)
    mask = (theta2 > _EPS).reshape(-1, 1, 1)
    return jnp.where(mask, normal, taylor)


if __name__ == "__main__":
    key = jax.random.PRNGKey(0)
    module = AngleAxis("rot_mat")

    # Small single-step case and a multi-step (grid > 1) case with padding.
    for n in (16, 2100):
        aa = jax.random.normal(jax.random.fold_in(key, n), (n, 3),
                               dtype=jnp.float32)
        # include a near-zero rotation to exercise the Taylor branch
        aa = aa.at[0].set(jnp.array([1e-5, -2e-5, 5e-6], dtype=jnp.float32))

        rot = jax.block_until_ready(module(aa))
        ref = _reference(aa)
        assert rot.shape == (n, 3, 3)
        assert jnp.allclose(rot, ref, atol=1e-5, rtol=1e-5)

    print("KERNEL_OK")
</pallas_src>

<mosaic_0001>
module attributes {stable_mosaic.version = 11 : i64} {
  func.func @_angle_axis_kernel(%arg0: i32, %arg1: memref<3x8x128xf32, #tpu.memory_space<vmem>>, %arg2: memref<9x8x128xf32, #tpu.memory_space<vmem>>) attributes {dimension_semantics = [#tpu.dimension_semantics<parallel>], iteration_bounds = array<i64: 1>, scalar_prefetch = 0 : i64, scratch_operands = 0 : i64, tpu.core_type = #tpu.core_type<tc>, window_params = [{transform_indices = @transform_0, window_bounds = array<i64: 3, 8, 128>}, {transform_indices = @transform_1, window_bounds = array<i64: 9, 8, 128>}]} {
    %c0 = arith.constant 0 : index
    %c0_0 = arith.constant 0 : index
    %c0_1 = arith.constant 0 : index
    %0 = vector.load %arg1[%c0, %c0_0, %c0_1] : memref<3x8x128xf32, #tpu.memory_space<vmem>>, vector<1x8x128xf32>
    %1 = vector.shape_cast %0 : vector<1x8x128xf32> to vector<8x128xf32>
    %c1 = arith.constant 1 : index
    %c0_2 = arith.constant 0 : index
    %c0_3 = arith.constant 0 : index
    %2 = vector.load %arg1[%c1, %c0_2, %c0_3] : memref<3x8x128xf32, #tpu.memory_space<vmem>>, vector<1x8x128xf32>
    %3 = vector.shape_cast %2 : vector<1x8x128xf32> to vector<8x128xf32>
    %c2 = arith.constant 2 : index
    %c0_4 = arith.constant 0 : index
    %c0_5 = arith.constant 0 : index
    %4 = vector.load %arg1[%c2, %c0_4, %c0_5] : memref<3x8x128xf32, #tpu.memory_space<vmem>>, vector<1x8x128xf32>
    %5 = vector.shape_cast %4 : vector<1x8x128xf32> to vector<8x128xf32>
    %6 = arith.mulf %1, %1 : vector<8x128xf32>
    %7 = arith.mulf %3, %3 : vector<8x128xf32>
    %8 = arith.addf %6, %7 : vector<8x128xf32>
    %9 = arith.mulf %5, %5 : vector<8x128xf32>
    %10 = arith.addf %8, %9 : vector<8x128xf32>
    %11 = math.sqrt %10 : vector<8x128xf32>
    %cst = arith.constant 9.99999997E-7 : f32
    %12 = vector.broadcast %cst : f32 to vector<8x128xf32>
    %13 = arith.addf %11, %12 : vector<8x128xf32>
    %cst_6 = arith.constant 1.000000e+00 : f32
    %14 = vector.broadcast %cst_6 : f32 to vector<8x128xf32>
    %15 = arith.divf %14, %13 : vector<8x128xf32>
    %16 = math.cos %11 : vector<8x128xf32>
    %17 = math.sin %11 : vector<8x128xf32>
    %cst_7 = arith.constant 1.000000e+00 : f32
    %18 = vector.broadcast %cst_7 : f32 to vector<8x128xf32>
    %19 = arith.subf %18, %16 : vector<8x128xf32>
    %cst_8 = arith.constant 9.99999997E-7 : f32
    %20 = vector.broadcast %cst_8 : f32 to vector<8x128xf32>
    %21 = arith.cmpf ogt, %10, %20 : vector<8x128xf32>
    %cst_9 = arith.constant 1.000000e+00 : f32
    %22 = vector.broadcast %cst_9 : f32 to vector<8x128xf32>
    %cst_10 = arith.constant 0.000000e+00 : f32
    %23 = vector.broadcast %cst_10 : f32 to vector<8x128xf32>
    %24 = arith.mulf %17, %15 : vector<8x128xf32>
    %25 = arith.select %21, %24, %22 : vector<8x128xi1>, vector<8x128xf32>
    %26 = arith.mulf %19, %15 : vector<8x128xf32>
    %27 = arith.mulf %26, %15 : vector<8x128xf32>
    %28 = arith.select %21, %27, %23 : vector<8x128xi1>, vector<8x128xf32>
    %29 = arith.select %21, %16, %22 : vector<8x128xi1>, vector<8x128xf32>
    %30 = arith.mulf %28, %1 : vector<8x128xf32>
    %31 = arith.mulf %30, %3 : vector<8x128xf32>
    %32 = arith.mulf %28, %1 : vector<8x128xf32>
    %33 = arith.mulf %32, %5 : vector<8x128xf32>
    %34 = arith.mulf %28, %3 : vector<8x128xf32>
    %35 = arith.mulf %34, %5 : vector<8x128xf32>
    %36 = arith.mulf %25, %1 : vector<8x128xf32>
    %37 = arith.mulf %25, %3 : vector<8x128xf32>
    %38 = arith.mulf %25, %5 : vector<8x128xf32>
    %39 = arith.mulf %28, %1 : vector<8x128xf32>
    %40 = arith.mulf %39, %1 : vector<8x128xf32>
    %41 = arith.addf %29, %40 : vector<8x128xf32>
    %c0_11 = arith.constant 0 : index
    %c0_12 = arith.constant 0 : index
    %c0_13 = arith.constant 0 : index
    %42 = vector.load %arg2[%c0_11, %c0_12, %c0_13] : memref<9x8x128xf32, #tpu.memory_space<vmem>>, vector<1x8x128xf32>
    %43 = vector.shape_cast %42 : vector<1x8x128xf32> to vector<8x128xf32>
    %44 = vector.shape_cast %41 : vector<8x128xf32> to vector<1x8x128xf32>
    tpu.vector_store %arg2[%c0_11, %c0_12, %c0_13], %44 {strides = array<i32>} : memref<9x8x128xf32, #tpu.memory_space<vmem>>, vector<1x8x128xf32>,
    %45 = arith.subf %31, %38 : vector<8x128xf32>
    %c1_14 = arith.constant 1 : index
    %c0_15 = arith.constant 0 : index
    %c0_16 = arith.constant 0 : index
    %46 = vector.load %arg2[%c1_14, %c0_15, %c0_16] : memref<9x8x128xf32, #tpu.memory_space<vmem>>, vector<1x8x128xf32>
    %47 = vector.shape_cast %46 : vector<1x8x128xf32> to vector<8x128xf32>
    %48 = vector.shape_cast %45 : vector<8x128xf32> to vector<1x8x128xf32>
    tpu.vector_store %arg2[%c1_14, %c0_15, %c0_16], %48 {strides = array<i32>} : memref<9x8x128xf32, #tpu.memory_space<vmem>>, vector<1x8x128xf32>,
    %49 = arith.addf %33, %37 : vector<8x128xf32>
    %c2_17 = arith.constant 2 : index
    %c0_18 = arith.constant 0 : index
    %c0_19 = arith.constant 0 : index
    %50 = vector.load %arg2[%c2_17, %c0_18, %c0_19] : memref<9x8x128xf32, #tpu.memory_space<vmem>>, vector<1x8x128xf32>
    %51 = vector.shape_cast %50 : vector<1x8x128xf32> to vector<8x128xf32>
    %52 = vector.shape_cast %49 : vector<8x128xf32> to vector<1x8x128xf32>
    tpu.vector_store %arg2[%c2_17, %c0_18, %c0_19], %52 {strides = array<i32>} : memref<9x8x128xf32, #tpu.memory_space<vmem>>, vector<1x8x128xf32>,
    %53 = arith.addf %31, %38 : vector<8x128xf32>
    %c3 = arith.constant 3 : index
    %c0_20 = arith.constant 0 : index
    %c0_21 = arith.constant 0 : index
    %54 = vector.load %arg2[%c3, %c0_20, %c0_21] : memref<9x8x128xf32, #tpu.memory_space<vmem>>, vector<1x8x128xf32>
    %55 = vector.shape_cast %54 : vector<1x8x128xf32> to vector<8x128xf32>
    %56 = vector.shape_cast %53 : vector<8x128xf32> to vector<1x8x128xf32>
    tpu.vector_store %arg2[%c3, %c0_20, %c0_21], %56 {strides = array<i32>} : memref<9x8x128xf32, #tpu.memory_space<vmem>>, vector<1x8x128xf32>,
    %57 = arith.mulf %28, %3 : vector<8x128xf32>
    %58 = arith.mulf %57, %3 : vector<8x128xf32>
    %59 = arith.addf %29, %58 : vector<8x128xf32>
    %c4 = arith.constant 4 : index
    %c0_22 = arith.constant 0 : index
    %c0_23 = arith.constant 0 : index
    %60 = vector.load %arg2[%c4, %c0_22, %c0_23] : memref<9x8x128xf32, #tpu.memory_space<vmem>>, vector<1x8x128xf32>
    %61 = vector.shape_cast %60 : vector<1x8x128xf32> to vector<8x128xf32>
    %62 = vector.shape_cast %59 : vector<8x128xf32> to vector<1x8x128xf32>
    tpu.vector_store %arg2[%c4, %c0_22, %c0_23], %62 {strides = array<i32>} : memref<9x8x128xf32, #tpu.memory_space<vmem>>, vector<1x8x128xf32>,
    %63 = arith.subf %35, %36 : vector<8x128xf32>
    %c5 = arith.constant 5 : index
    %c0_24 = arith.constant 0 : index
    %c0_25 = arith.constant 0 : index
    %64 = vector.load %arg2[%c5, %c0_24, %c0_25] : memref<9x8x128xf32, #tpu.memory_space<vmem>>, vector<1x8x128xf32>
    %65 = vector.shape_cast %64 : vector<1x8x128xf32> to vector<8x128xf32>
    %66 = vector.shape_cast %63 : vector<8x128xf32> to vector<1x8x128xf32>
    tpu.vector_store %arg2[%c5, %c0_24, %c0_25], %66 {strides = array<i32>} : memref<9x8x128xf32, #tpu.memory_space<vmem>>, vector<1x8x128xf32>,
    %67 = arith.subf %33, %37 : vector<8x128xf32>
    %c6 = arith.constant 6 : index
    %c0_26 = arith.constant 0 : index
    %c0_27 = arith.constant 0 : index
    %68 = vector.load %arg2[%c6, %c0_26, %c0_27] : memref<9x8x128xf32, #tpu.memory_space<vmem>>, vector<1x8x128xf32>
    %69 = vector.shape_cast %68 : vector<1x8x128xf32> to vector<8x128xf32>
    %70 = vector.shape_cast %67 : vector<8x128xf32> to vector<1x8x128xf32>
    tpu.vector_store %arg2[%c6, %c0_26, %c0_27], %70 {strides = array<i32>} : memref<9x8x128xf32, #tpu.memory_space<vmem>>, vector<1x8x128xf32>,
    %71 = arith.addf %35, %36 : vector<8x128xf32>
    %c7 = arith.constant 7 : index
    %c0_28 = arith.constant 0 : index
    %c0_29 = arith.constant 0 : index
    %72 = vector.load %arg2[%c7, %c0_28, %c0_29] : memref<9x8x128xf32, #tpu.memory_space<vmem>>, vector<1x8x128xf32>
    %73 = vector.shape_cast %72 : vector<1x8x128xf32> to vector<8x128xf32>
    %74 = vector.shape_cast %71 : vector<8x128xf32> to vector<1x8x128xf32>
    tpu.vector_store %arg2[%c7, %c0_28, %c0_29], %74 {strides = array<i32>} : memref<9x8x128xf32, #tpu.memory_space<vmem>>, vector<1x8x128xf32>,
    %75 = arith.mulf %28, %5 : vector<8x128xf32>
    %76 = arith.mulf %75, %5 : vector<8x128xf32>
    %77 = arith.addf %29, %76 : vector<8x128xf32>
    %c8 = arith.constant 8 : index
    %c0_30 = arith.constant 0 : index
    %c0_31 = arith.constant 0 : index
    %78 = vector.load %arg2[%c8, %c0_30, %c0_31] : memref<9x8x128xf32, #tpu.memory_space<vmem>>, vector<1x8x128xf32>
    %79 = vector.shape_cast %78 : vector<1x8x128xf32> to vector<8x128xf32>
    %80 = vector.shape_cast %77 : vector<8x128xf32> to vector<1x8x128xf32>
    tpu.vector_store %arg2[%c8, %c0_30, %c0_31], %80 {strides = array<i32>} : memref<9x8x128xf32, #tpu.memory_space<vmem>>, vector<1x8x128xf32>,
    return
  }
  func.func @transform_0(%arg0: i32) -> (i32, i32, i32) {
    %c0_i32 = arith.constant 0 : i32
    %c0_i32_0 = arith.constant 0 : i32
    %c0_i32_1 = arith.constant 0 : i32
    return %c0_i32, %arg0, %c0_i32_0 : i32, i32, i32
  }
  func.func @transform_1(%arg0: i32) -> (i32, i32, i32) {
    %c0_i32 = arith.constant 0 : i32
    %c0_i32_0 = arith.constant 0 : i32
    %c0_i32_1 = arith.constant 0 : i32
    return %c0_i32, %arg0, %c0_i32_0 : i32, i32, i32
  }
}

</mosaic_0001>

<bundles_post_ra>
// kernel: tpu_custom_call.1
= control target key start
LH: loop header
LB: loop body
LE: loop exit
PB: predicated region body
PF: predicated region fallthrough
CT: control target
= control target key end

     0   :  { %6 = vsyncpa [#allocation3], 0  ;;  %s630_s0 = inlined_call_operand.hbm [shape: f32[3,8,128], index: 0, kind: input, shape index: {}]   ;;  %s631_s1 = inlined_call_operand.hbm [shape: f32[9,8,128], index: 1, kind: output, shape index: {}]  }
   0x1   :  { %7 = vsyncpa [#allocation4], 0  ;;  %s12_s8 = sshll.u32 %s630_s0, 4  ;;  %s510_s9 = smov [#allocation2]   ;;  %s13_s8 = int_to_ptr.hbm [resolvable:$true] %s12_s8 }
   0x2   :  { %s14_s10 = sshll.u32 %s510_s9, 4  ;;  %s511_s11 = smov 128   ;;  %s15_s10 = int_to_ptr.vmem [resolvable:$true] %s14_s10 }
   0x3   :  { %s512_s12 = smov 8  }
   0x4   :  { %20 = dma.hbm_to_vmem [thread:$0]  %s13_s8, 384, %s15_s10, [#allocation3], %s511_s11, %s511_s11, %s512_s12  }
   0x5   :  { %506 = dma.done.wait [#allocation3], 384  }
   0x6   :  { %507 = vsyncadd [#allocation3], 4294966912  ;;  %v537_v0 = vld [vmem:[#allocation2] sm:$0xff]  ;;  %v539_v1 = vld [vmem:[#allocation2 + $0x8] sm:$0xff]  ;;  %v513_v29 = vmov 683565275  }
   0x7   :  { %v541_v2 = vld [vmem:[#allocation2 + $0x10] sm:$0xff]  ;;  %v30_v3 = vmul.f32 %v537_v0, %v537_v0  ;;  %v31_v4 = vmul.f32 %v539_v1, %v539_v1  ;;  %v514_v31 = vmov 2475754826   ;;  %v515_v33 = vmov 2131351028   ;;  %s520_s0 = smov [#allocation5]  }
   0x8   :  { %v33_v5 = vmul.f32 %v541_v2, %v541_v2  ;;  %v516_v35 = vmov 2102212464   ;;  %v517_v37 = vmov 920167782   ;;  %v518_v43 = vmov 1326507024  }
   0x9   :  { %v32_v6 = vadd.f32 %v31_v4, %v30_v3  ;;  %s422_s13 = sshll.u32 %s520_s0, 4  ;;  %s424_s16 = sshll.u32 %s631_s1, 4  ;;  %s423_s13 = int_to_ptr.vmem [resolvable:$true] %s422_s13  ;;  %s425_s16 = int_to_ptr.hbm [resolvable:$true] %s424_s16 }
   0xb   :  { %v549_v7 = vadd.f32 %v33_v5, %v32_v6 }
   0xd   :  { %454 = vrsqrt.f32 %v549_v7  ;;  %vm42_vm0 = vcmp.eq.f32.partialorder %v549_v7, inf  ;;  %v45_v14 = vand.u32 2147483648, %v549_v7  ;;  %vm44_vm1 = vcmp.eq.f32.partialorder %v549_v7, 0.0 }
  0x13   :  { %v455_v8 = vpop.eup %454 }
  0x14   :  { %v36_v9 = vmul.f32 %v455_v8, %v549_v7 }
  0x16   :  { %v37_v10 = vmul.f32 %v455_v8, %v36_v9 }
  0x18   :  { %v38_v11 = vmul.f32 0.5, %v37_v10 }
  0x1a   :  { %v39_v12 = vsub.f32 1.5, %v38_v11 }
  0x1c   :  { %v40_v13 = vmul.f32 %v455_v8, %v39_v12 }
  0x1e   :  { %v41_v15 = vmul.f32 %v40_v13, %v549_v7 }
  0x20   :  { %v43_v16 = vsel %vm42_vm0, %v549_v7, %v41_v15 }
  0x21   :  { %v558_v17 = vsel %vm44_vm1, %v45_v14, %v43_v16 }
  0x22   :  { %v66_v18 = vand.u32 2139095040, %v558_v17  ;;  %v63_v20 = vand.u32 2147483647, %v558_v17  ;;  %vm65_vm14 = vcmp.lt.s32.totalorder %v558_v17, 0 }
  0x24   :  { %v67_v19 = vshrl.u32 %v66_v18, 23  ;;  %v70_v23 = vand.u32 8388607, %v63_v20  ;;  %vm64_vm15 = vcmp.le.f32.partialorder %v63_v20, 0.7853982 }
  0x26   :  { %v437_v21 = vadd.s32 4294967169, %v67_v19  ;;  %v71_v27 = vor.u32 8388608, %v70_v23  ;;  %v519_v23 = vmov 0  }
  0x28   :  { %v73_v22 = vadd.s32 1, %v437_v21  ;;  %v567_v47 = vshll.u32 %v71_v27, 8 }
  0x2a   :  { %vm74_vm2 = vcmp.gt.s32.totalorder %v73_v22, 0  ;;  %v112_v57 = vand.u32 65535, %v567_v47  ;;  %v113_v58 = vshrl.u32 %v567_v47, 16 }
  0x2b   :  { %v75_v24 = vsel %vm74_vm2, %v73_v22, 0 }
  0x2c   :  { %v77_v25 = vand.u32 31, %v75_v24  ;;  %v564_v26 = vshrl.u32 %v75_v24, 5 }
  0x2e   :  { %v78_v28 = vsub.s32 32, %v77_v25  ;;  %v80_v30 = vshll.u32 %v513_v29, %v77_v25  ;;  %v83_v32 = vshll.u32 %v514_v31, %v77_v25  ;;  %v86_v34 = vshll.u32 %v515_v33, %v77_v25 }
  0x2f   :  { %v89_v36 = vshll.u32 %v516_v35, %v77_v25  ;;  %v92_v38 = vshll.u32 %v517_v37, %v77_v25  ;;  %vm95_vm3 = vcmp.lt.s32.totalorder %v564_v26, 1  ;;  %vm97_vm4 = vcmp.lt.s32.totalorder %v564_v26, 3 }
  0x30   :  { %v81_v39 = vshrl.u32 %v514_v31, %v78_v28  ;;  %v84_v40 = vshrl.u32 %v515_v33, %v78_v28  ;;  %v87_v41 = vshrl.u32 %v516_v35, %v78_v28  ;;  %v90_v42 = vshrl.u32 %v517_v37, %v78_v28 }
  0x31   :  { %v93_v44 = vshrl.u32 %v518_v43, %v78_v28  ;;  %vm96_vm5 = vcmp.lt.s32.totalorder %v564_v26, 2  ;;  %vm98_vm6 = vcmp.lt.s32.totalorder %v564_v26, 4  ;;  %v79_v4 = vshrl.u32 %v513_v29, %v78_v28 }
  0x32   :  { %v82_v45 = vor.u32 %v81_v39, %v80_v30  ;;  %v85_v46 = vor.u32 %v84_v40, %v83_v32  ;;  %v88_v48 = vor.u32 %v87_v41, %v86_v34  ;;  %v91_v49 = vor.u32 %v90_v42, %v89_v36 }
  0x33   :  { %v94_v50 = vor.u32 %v93_v44, %v92_v38 }
  0x34   :  { %v103_v51 = vsel %vm95_vm3, %v82_v45, %v85_v46  ;;  %v104_v52 = vsel %vm98_vm6, %v91_v49, 920167782  ;;  %v107_v53 = vsel %vm95_vm3, %v85_v46, %v88_v48  ;;  %v99_v19 = vsel %vm95_vm3, %v79_v4, %v82_v45 }
  0x35   :  { %v108_v54 = vsel %vm98_vm6, %v94_v50, 1326507024  ;;  %v105_v55 = vsel %vm97_vm4, %v88_v48, %v104_v52  ;;  %v100_v22 = vsel %vm98_vm6, %v88_v48, 2102212464 }
  0x36   :  { %v109_v56 = vsel %vm97_vm4, %v91_v49, %v108_v54  ;;  %v106_v59 = vsel %vm96_vm5, %v103_v51, %v105_v55  ;;  %v101_v33 = vsel %vm97_vm4, %v85_v46, %v100_v22 }
  0x37   :  { %v110_v60 = vsel %vm96_vm5, %v107_v53, %v109_v56  ;;  %v136_v63 = vand.u32 65535, %v106_v59  ;;  %v137_v3 = vshrl.u32 %v106_v59, 16  ;;  %v102_v41 = vsel %vm96_vm5, %v99_v19, %v101_v33 }
  0x38   :  { %v114_v61 = vand.u32 65535, %v110_v60  ;;  %v115_v62 = vshrl.u32 %v110_v60, 16  ;;  %v156_v45 = vmul.u32 %v567_v47, %v102_v41 }
  0x39   :  { %v138_v9 = vmul.u32 %v136_v63, %v112_v57  ;;  %v139_v10 = vmul.u32 %v137_v3, %v112_v57  ;;  %v140_v11 = vmul.u32 %v136_v63, %v113_v58  ;;  %v141_v15 = vmul.u32 %v137_v3, %v113_v58 }
  0x3a   :  { %v116_v5 = vmul.u32 %v114_v61, %v112_v57  ;;  %v117_v6 = vmul.u32 %v115_v62, %v112_v57  ;;  %v118_v8 = vmul.u32 %v114_v61, %v113_v58  ;;  %v119_v12 = vmul.u32 %v115_v62, %v113_v58 }
  0x3b   :  { %v142_v16 = vshll.u32 %v139_v10, 16  ;;  %v144_v18 = vshll.u32 %v140_v11, 16  ;;  %v143_v31 = vshrl.u32 %v139_v10, 16  ;;  %v145_v37 = vshrl.u32 %v140_v11, 16 }
  0x3c   :  { %v120_v13 = vshll.u32 %v117_v6, 16  ;;  %v122_v14 = vshll.u32 %v118_v8, 16  ;;  %v121_v27 = vshrl.u32 %v117_v6, 16  ;;  %v123_v34 = vshrl.u32 %v118_v8, 16 }
  0x3d   :  { %vm146_vm8 = vc.u32 %v138_v9, %v142_v16  ;;  %v148_v25 = vadd.s32 %v142_v16, %v138_v9  ;;  %v47_v63 = vadd.f32 1e-06, %v558_v17 }
  0x3e   :  { %vm124_vm7 = vc.u32 %v116_v5, %v120_v13  ;;  %v126_v21 = vadd.s32 %v120_v13, %v116_v5  ;;  %v147_v29 = vsel %vm146_vm8, 1, %v519_v23 }
  0x3f   :  { %v125_v24 = vsel %vm124_vm7, 1, %v519_v23  ;;  %v149_v32 = vadd.s32 %v147_v29, %v141_v15  ;;  %vm150_vm10 = vc.u32 %v148_v25, %v144_v18  ;;  %v152_v40 = vadd.s32 %v148_v25, %v144_v18 }
  0x40   :  { %v127_v28 = vadd.s32 %v125_v24, %v119_v12  ;;  %vm128_vm9 = vc.u32 %v126_v21, %v122_v14  ;;  %v151_v36 = vsel %vm150_vm10, 1, %v519_v23  ;;  %456 = vrcp.f32 %v47_v63 }
  0x41   :  { %v129_v30 = vsel %vm128_vm9, 1, %v519_v23  ;;  %v153_v38 = vadd.s32 %v151_v36, %v149_v32  ;;  %vm53_vm0 = vweird.f32 %v47_v63  ;;  %v59_v36 = vand.u32 2147483648, %v47_v63 }
  0x42   :  { %v131_v35 = vadd.s32 %v129_v30, %v127_v28  ;;  %vm206_vm10 = vweird.f32 %v558_v17 }
  0x43   :  { %v154_v42 = vadd.s32 %v153_v38, %v143_v31 }
  0x44   :  { %v132_v39 = vadd.s32 %v131_v35, %v121_v27 }
  0x45   :  { %v155_v44 = vadd.s32 %v154_v42, %v145_v37 }
  0x46   :  { %v133_v43 = vadd.s32 %v132_v39, %v123_v34  ;;  %v457_v12 = vpop.eup %456 }
  0x47   :  { %v159_v48 = vadd.s32 1, %v155_v44  ;;  %v49_v16 = vmul.f32 %v457_v12, %v47_v63  ;;  %vm54_vm1 = vweird.f32 %v457_v12 }
  0x48   :  { %vm158_vm11 = vc.u32 %v133_v43, %v152_v40  ;;  %v157_v26 = vadd.s32 %v152_v40, %v133_v43  ;;  %v57_v40 = vand.u32 2147483647, %v47_v63  ;;  %vm604_vm4 = vmor %vm53_vm0, %vm54_vm1 }
  0x49   :  { %v160_v49 = vsel %vm158_vm11, %v159_v48, %v155_v44  ;;  %v50_v25 = vsub.f32 1.0, %v49_v16  ;;  %v60_v44 = vor.u32 1.1754944e-38, %v59_v36  ;;  %vm373_vm11 = vcmp.gt.f32.partialorder %v549_v7, 1e-06 }
  0x4a   :  { %v161_v50 = vadd.s32 %v160_v49, %v156_v45  ;;  %vm58_vm9 = vcmp.eq.f32.partialorder %v57_v40, 8.507059e+37 }
  0x4b   :  { %v51_v31 = vmul.f32 %v457_v12, %v50_v25 }
  0x4c   :  { %v162_v46 = vadd.s32 536870912, %v161_v50 }
  0x4d   :  { %v52_v39 = vadd.f32 %v457_v12, %v51_v31 }
  0x4e   :  { %v163_v51 = vshrl.u32 %v162_v46, 30 }
  0x50   :  { %v164_v52 = vshll.u32 %v163_v51, 30  ;;  %v187_v11 = vsub.s32 4, %v163_v51 }
  0x52   :  { %v165_v53 = vsub.s32 %v161_v50, %v164_v52  ;;  %v188_v18 = vsel %vm65_vm14, %v187_v11, %v163_v51  ;;  %v56_v50 = vsel %vm604_vm4, %v457_v12, %v52_v39 }
  0x53   :  { %v190_v22 = vsel %vm64_vm15, 0, %v188_v18 }
  0x54   :  { %vm166_vm12 = vcmp.lt.s32.totalorder %v165_v53, 0  ;;  %v167_v54 = vsub.s32 0, %v165_v53  ;;  %v361_v27 = vadd.s32 3, %v190_v22  ;;  %v207_v32 = vand.u32 3, %v190_v22 }
  0x56   :  { %v168_v55 = vsel %vm166_vm12, %v167_v54, %v165_v53  ;;  %v362_v33 = vand.u32 3, %v361_v27  ;;  %vm212_vm2 = vcmp.eq.s32.totalorder %v207_v32, 2  ;;  %vm208_vm5 = vcmp.lt.s32.totalorder %v207_v32, 2 }
  0x57   :  { %v169_v56 = vclz %v168_v55  ;;  %vm209_vm6 = vcmp.eq.s32.totalorder %v207_v32, 0  ;;  %v61_v54 = vsel %vm58_vm9, %v60_v44, %v56_v50 }
  0x58   :  { %vm367_vm3 = vcmp.eq.s32.totalorder %v362_v33, 2  ;;  %vm364_vm7 = vcmp.eq.s32.totalorder %v362_v33, 0  ;;  %vm363_vm8 = vcmp.lt.s32.totalorder %v362_v33, 2 }
  0x59   :  { %v438_v57 = vadd.s32 4294967294, %v169_v56 }
  0x5b   :  { %vm439_vm13 = vcmp.lt.s32.totalorder %v438_v57, 0 }
  0x5c   :  { %v172_v58 = vsel %vm439_vm13, 0, %v438_v57 }
  0x5d   :  { %v173_v59 = vsub.s32 32, %v172_v58  ;;  %v174_v60 = vshll.u32 %v165_v53, %v172_v58  ;;  %v177_v61 = vsub.s32 4294967266, %v172_v58 }
  0x5f   :  { %v175_v47 = vshrl.u32 %v157_v26, %v173_v59  ;;  %v178_v62 = vadd.s32 127, %v177_v61 }
  0x61   :  { %v176_v3 = vor.u32 %v175_v47, %v174_v60  ;;  %v179_v4 = vshll.u32 %v178_v62, 23 }
  0x63   :  { %v180_v5 = vor.u32 4788187, %v179_v4  ;;  %v183_v6 = vcvt.s32.f32 %v176_v3 }
  0x65   :  { %v181_v8 = vand.u32 2147483647, %v180_v5 }
  0x67   :  { %v184_v9 = vmul.f32 %v183_v6, %v181_v8 }
  0x69   :  { %v185_v10 = vxor.u32 2147483648, %v184_v9 }
  0x6b   :  { %v186_v13 = vsel %vm65_vm14, %v185_v10, %v184_v9 }
  0x6c   :  { %v189_v14 = vsel %vm64_vm15, %v558_v17, %v186_v13 }
  0x6d   :  { %v191_v15 = vmul.f32 %v189_v14, %v189_v14 }
  0x6f   :  { %v192_v19 = vmul.f32 -0.001358992, %v191_v15  ;;  %v199_v21 = vmul.f32 -0.00019511016, %v191_v15 }
  0x71   :  { %v193_v23 = vadd.f32 0.041655596, %v192_v19  ;;  %v200_v24 = vadd.f32 0.008332121, %v199_v21 }
  0x73   :  { %v194_v28 = vmul.f32 %v193_v23, %v191_v15  ;;  %v201_v29 = vmul.f32 %v200_v24, %v191_v15 }
  0x75   :  { %v195_v30 = vadd.f32 -0.4999988, %v194_v28  ;;  %v202_v20 = vadd.f32 -0.16666654, %v201_v29 }
  0x77   :  { %v196_v34 = vmul.f32 %v195_v30, %v191_v15  ;;  %v203_v35 = vmul.f32 %v202_v20, %v191_v15 }
  0x79   :  { %v197_v37 = vadd.f32 1.0, %v196_v34  ;;  %v204_v38 = vadd.f32 1.0, %v203_v35 }
  0x7b   :  { %v205_v42 = vmul.f32 %v204_v38, %v189_v14  ;;  %v213_v43 = vxor.u32 2147483648, %v197_v37 }
  0x7d   :  { %v210_v45 = vxor.u32 2147483648, %v205_v42  ;;  %v214_v48 = vsel %vm212_vm2, %v213_v43, %v205_v42  ;;  %v369_v49 = vsel %vm367_vm3, %v213_v43, %v205_v42 }
  0x7f   :  { %v211_v46 = vsel %vm209_vm6, %v197_v37, %v210_v45  ;;  %v366_v51 = vsel %vm364_vm7, %v197_v37, %v210_v45 }
  0x80   :  { %v215_v52 = vsel %vm208_vm5, %v211_v46, %v214_v48  ;;  %v370_v53 = vsel %vm363_vm8, %v366_v51, %v369_v49 }
  0x81   :  { %v216_v55 = vsel %vm206_vm10, nan, %v215_v52  ;;  %v371_v56 = vsel %vm206_vm10, nan, %v370_v53 }
  0x82   :  { %v372_v57 = vsub.f32 1.0, %v216_v55  ;;  %v374_v26 = vmul.f32 %v371_v56, %v61_v54  ;;  %v379_v3 = vsel %vm373_vm11, %v216_v55, 1.0 }
  0x84   :  { %v376_v58 = vmul.f32 %v372_v57, %v61_v54  ;;  %v375_v60 = vsel %vm373_vm11, %v374_v26, 1.0 }
  0x85   :  { %v387_v62 = vmul.f32 %v375_v60, %v541_v2  ;;  %v386_v17 = vmul.f32 %v375_v60, %v539_v1  ;;  %v385_v10 = vmul.f32 %v375_v60, %v537_v0 }
  0x86   :  { %v377_v59 = vmul.f32 %v376_v58, %v61_v54 }
  0x88   :  { %v378_v61 = vsel %vm373_vm11, %v377_v59, 0.0 }
  0x89   :  { %v380_v47 = vmul.f32 %v378_v61, %v537_v0  ;;  %v383_v63 = vmul.f32 %v378_v61, %v539_v1  ;;  %v413_v4 = vmul.f32 %v378_v61, %v541_v2 }
  0x8b   :  { %v388_v5 = vmul.f32 %v380_v47, %v537_v0  ;;  %v381_v6 = vmul.f32 %v380_v47, %v539_v1  ;;  %v382_v7 = vmul.f32 %v380_v47, %v541_v2  ;;  %v400_v8 = vmul.f32 %v383_v63, %v539_v1 }
  0x8c   :  { %v384_v9 = vmul.f32 %v383_v63, %v541_v2  ;;  %v414_v16 = vmul.f32 %v413_v4, %v541_v2 }
  0x8d   :  { %v389_v11 = vadd.f32 %v388_v5, %v379_v3  ;;  %v391_v12 = vsub.f32 %v381_v6, %v387_v62  ;;  %v394_v13 = vadd.f32 %v386_v17, %v382_v7  ;;  %v397_v14 = vadd.f32 %v387_v62, %v381_v6 }
  0x8e   :  { %v401_v15 = vadd.f32 %v400_v8, %v379_v3  ;;  %v404_v18 = vsub.f32 %v384_v9, %v385_v10  ;;  %v407_v19 = vsub.f32 %v382_v7, %v386_v17  ;;  %v410_v21 = vadd.f32 %v385_v10, %v384_v9 }
  0x8f   :  { %390 = vst [vmem:[#allocation5] sm:$0xff] %v389_v11  ;;  %v415_v0 = vadd.f32 %v414_v16, %v379_v3 }
  0x90   :  { %393 = vst [vmem:[#allocation5 + $0x8] sm:$0xff] %v391_v12 }
  0x91   :  { %396 = vst [vmem:[#allocation5 + $0x10] sm:$0xff] %v394_v13 }
  0x92   :  { %399 = vst [vmem:[#allocation5 + $0x18] sm:$0xff] %v397_v14 }
  0x93   :  { %403 = vst [vmem:[#allocation5 + $0x20] sm:$0xff] %v401_v15 }
  0x94   :  { %406 = vst [vmem:[#allocation5 + $0x28] sm:$0xff] %v404_v18 }
  0x95   :  { %409 = vst [vmem:[#allocation5 + $0x30] sm:$0xff] %v407_v19 }
  0x96   :  { %412 = vst [vmem:[#allocation5 + $0x38] sm:$0xff] %v410_v21 }
  0x97   :  { %417 = vst [vmem:[#allocation5 + $0x40] sm:$0xff] %v415_v0 }
  0x98   :  { %430 = dma.vmem_to_hbm [thread:$0]  %s423_s13, 1152, %s425_s16, [#allocation4], %s511_s11, %s511_s11, %s512_s12  }
  0x99   :  { %508 = dma.done.wait [#allocation4], 1152  }
  0x9a   :  { %509 = vsyncadd [#allocation4], 4294966144 }
  0x9b   :  { %435 = vsyncpa [#allocation3], 1 }
  0x9c   :  { %436 = vsyncpa [#allocation4], 1 }

</bundles_post_ra>
